<compile_context>
chip_gen: v5e
topology: v5e:2x2
jax: 0.10.0
libtpu: 0.0.40
codegen_flags: <defaults>
</compile_context>

<pallas_src>
import math

import jax
import jax.numpy as jnp
from jax.experimental import pallas as pl
from jax.experimental.pallas import tpu as pltpu


def _round_up(x: int, m: int) -> int:
    return (x + m - 1) // m * m


def _sac_critic_kernel(obs_ref, act_ref, w1o_ref, w1a_ref, b1_ref,
                       w2_ref, b2_ref, w3_ref, b3_ref, o_ref):
    """One (critic e, batch tile b) grid point: 4 MXU dots + biases + 2 ReLUs."""
    dd = w2_ref.dtype                                   # dot-operand dtype (f32 or bf16)
    obs = obs_ref[...].astype(dd)
    act = act_ref[...].astype(dd)
    # concat([obs, act], -1) @ W1  ==  obs @ W1[:obs_dim] + act @ W1[obs_dim:]
    h1 = (jnp.dot(obs, w1o_ref[...], preferred_element_type=jnp.float32)
          + jnp.dot(act, w1a_ref[...], preferred_element_type=jnp.float32)
          + b1_ref[...])
    h1 = jnp.maximum(h1, 0.0)
    h2 = jnp.dot(h1.astype(dd), w2_ref[...], preferred_element_type=jnp.float32) + b2_ref[...]
    h2 = jnp.maximum(h2, 0.0)
    q = jnp.dot(h2.astype(dd), w3_ref[...], preferred_element_type=jnp.float32) + b3_ref[...]
    o_ref[...] = q.astype(o_ref.dtype)


def pack_ensemble_params(per_critic_params, obs_dim, *, weight_dtype=jnp.float32,
                         lane_pad=128):
    """Stack per-critic (w1, b1, w2, b2, w3, b3) params for the fused kernel.

    Weights are stored (in_features, out_features) (transposed vs. torch
    nn.Linear); biases are (1, out_features). W1 is split at obs_dim so the
    kernel never needs the concatenated input, and the last layer is
    zero-padded to `lane_pad` output lanes so the output store is lane-dense.
    Weights may be cast to bf16 (MXU operands); biases stay f32.
    """
    w1 = jnp.stack([p[0] for p in per_critic_params])            # (E, D, H)
    b1 = jnp.stack([p[1] for p in per_critic_params])            # (E, 1, H)
    w2 = jnp.stack([p[2] for p in per_critic_params])            # (E, H, H)
    b2 = jnp.stack([p[3] for p in per_critic_params])            # (E, 1, H)
    w3 = jnp.stack([p[4] for p in per_critic_params])            # (E, H, NC)
    b3 = jnp.stack([p[5] for p in per_critic_params])            # (E, 1, NC)

    num_critics = w3.shape[-1]
    nc_pad = _round_up(num_critics, lane_pad)
    if nc_pad != num_critics:
        w3 = jnp.pad(w3, ((0, 0), (0, 0), (0, nc_pad - num_critics)))
        b3 = jnp.pad(b3, ((0, 0), (0, 0), (0, nc_pad - num_critics)))

    w1_obs = w1[:, :obs_dim, :].astype(weight_dtype)
    w1_act = w1[:, obs_dim:, :].astype(weight_dtype)
    w2 = w2.astype(weight_dtype)
    w3 = w3.astype(weight_dtype)
    packed = (w1_obs, w1_act, b1, w2, b2, w3, b3)
    return packed, num_critics


def sac_critic_forward(obs, action, packed, num_critics, *, block_b=256):
    """Fused ensemble forward.

    obs:    (B, obs_dim)  f32
    action: (B, act_dim)  f32
    returns (E, B, num_critics) f32 -- all E critic networks in one pallas_call.
    """
    w1_obs, w1_act, b1, w2, b2, w3, b3 = packed
    E, obs_dim, H = w1_obs.shape
    act_dim = w1_act.shape[1]
    nc_pad = w3.shape[-1]
    B = obs.shape[0]

    # Batch tile: sublane-aligned, at most block_b; pad B up to a multiple of it.
    tb = min(_round_up(B, 8), block_b)
    b_padded = _round_up(B, tb)
    if b_padded != B:
        obs = jnp.pad(obs, ((0, b_padded - B), (0, 0)))
        action = jnp.pad(action, ((0, b_padded - B), (0, 0)))
    n_b = b_padded // tb

    act_spec = lambda d: pl.BlockSpec((tb, d), lambda e, b: (b, 0))
    w_spec = lambda s: pl.BlockSpec((None,) + s, lambda e, b: (e, 0, 0))

    flops = 2 * E * b_padded * H * (obs_dim + act_dim + H + nc_pad)
    bytes_accessed = int(
        E * (obs.size + action.size) * obs.dtype.itemsize
        + sum(a.size * a.dtype.itemsize for a in packed)
        + E * b_padded * nc_pad * 4
    )

    q = pl.pallas_call(
        _sac_critic_kernel,
        out_shape=jax.ShapeDtypeStruct((E, b_padded, nc_pad), jnp.float32),
        # batch axis innermost -> weights stay VMEM-resident across batch steps
        grid=(E, n_b),
        in_specs=[
            act_spec(obs_dim),          # obs       (tb, obs_dim)
            act_spec(act_dim),          # action    (tb, act_dim)
            w_spec((obs_dim, H)),       # W1[:obs_dim]
            w_spec((act_dim, H)),       # W1[obs_dim:]
            w_spec((1, H)),             # b1
            w_spec((H, H)),             # W2
            w_spec((1, H)),             # b2
            w_spec((H, nc_pad)),        # W3 (lane-padded)
            w_spec((1, nc_pad)),        # b3 (lane-padded)
        ],
        out_specs=pl.BlockSpec((None, tb, nc_pad), lambda e, b: (e, b, 0)),
        compiler_params=pltpu.CompilerParams(
            dimension_semantics=("parallel", "parallel")),
        cost_estimate=pl.CostEstimate(
            flops=flops, transcendentals=0, bytes_accessed=bytes_accessed),
    )(obs, action, *packed)

    return q[:, :B, :num_critics]


def init_params(key, obs_dim, act_dim, hidden, num_critics):
    """PyTorch nn.Linear-style init (uniform +-1/sqrt(fan_in)); weights (in, out)."""
    in_dim = obs_dim + act_dim
    ks = jax.random.split(key, 6)

    def lin(kw, kb, fan_in, fan_out):
        bound = 1.0 / math.sqrt(fan_in)
        w = jax.random.uniform(kw, (fan_in, fan_out), jnp.float32, -bound, bound)
        b = jax.random.uniform(kb, (1, fan_out), jnp.float32, -bound, bound)
        return w, b

    w1, b1 = lin(ks[0], ks[1], in_dim, hidden)
    w2, b2 = lin(ks[2], ks[3], hidden, hidden)
    w3, b3 = lin(ks[4], ks[5], hidden, num_critics)
    return (w1, b1, w2, b2, w3, b3)


def reference_forward(obs, action, params):
    """Plain-JAX reference of one SACCritic forward."""
    w1, b1, w2, b2, w3, b3 = params
    x = jnp.concatenate([obs, action], axis=-1)
    h1 = jnp.maximum(x @ w1 + b1, 0.0)
    h2 = jnp.maximum(h1 @ w2 + b2, 0.0)
    return h2 @ w3 + b3


if __name__ == "__main__":
    # Small shapes consistent with SACCritic: obs_dim + act_dim MLP input,
    # two hidden layers, num_critics q-value heads; an ensemble of 2 critic
    # networks (as in SAC's twin critics) fused into a single pallas_call.
    batch = 8
    obs_dim = 12
    act_dim = 4
    hidden = 32
    num_critics = 2
    ensemble = 2

    key = jax.random.PRNGKey(0)
    k_obs, k_act, k_par = jax.random.split(key, 3)

    obs = jax.random.normal(k_obs, (batch, obs_dim), jnp.float32)
    action = jax.random.normal(k_act, (batch, act_dim), jnp.float32)

    per_critic = [init_params(k, obs_dim, act_dim, hidden, num_critics)
                  for k in jax.random.split(k_par, ensemble)]
    # f32 weights here to keep a tight correctness check; pass
    # weight_dtype=jnp.bfloat16 for the bf16-MXU-operand variant (v5e/v6e win).
    packed, nc = pack_ensemble_params(per_critic, obs_dim, weight_dtype=jnp.float32)

    q = sac_critic_forward(obs, action, packed, nc)
    q = jax.block_until_ready(q)

    q_ref = jnp.stack([reference_forward(obs, action, p) for p in per_critic])
    assert q.shape == (ensemble, batch, num_critics), q.shape
    assert jnp.allclose(q, q_ref, atol=1e-4, rtol=1e-4), float(jnp.abs(q - q_ref).max())

    print("KERNEL_OK")
</pallas_src>

<mosaic_0001>
module attributes {stable_mosaic.version = 11 : i64} {
  func.func @_sac_critic_kernel(%arg0: i32, %arg1: i32, %arg2: memref<8x12xf32, #tpu.memory_space<vmem>>, %arg3: memref<8x4xf32, #tpu.memory_space<vmem>>, %arg4: memref<1x12x32xf32, #tpu.memory_space<vmem>>, %arg5: memref<1x4x32xf32, #tpu.memory_space<vmem>>, %arg6: memref<1x1x32xf32, #tpu.memory_space<vmem>>, %arg7: memref<1x32x32xf32, #tpu.memory_space<vmem>>, %arg8: memref<1x1x32xf32, #tpu.memory_space<vmem>>, %arg9: memref<1x32x128xf32, #tpu.memory_space<vmem>>, %arg10: memref<1x1x128xf32, #tpu.memory_space<vmem>>, %arg11: memref<1x8x128xf32, #tpu.memory_space<vmem>>) attributes {dimension_semantics = [#tpu.dimension_semantics<parallel>, #tpu.dimension_semantics<parallel>], iteration_bounds = array<i64: 2, 1>, scalar_prefetch = 0 : i64, scratch_operands = 0 : i64, tpu.core_type = #tpu.core_type<tc>, window_params = [{transform_indices = @transform_0, window_bounds = array<i64: 8, 12>}, {transform_indices = @transform_1, window_bounds = array<i64: 8, 4>}, {transform_indices = @transform_2, window_bounds = array<i64: 1, 12, 32>}, {transform_indices = @transform_3, window_bounds = array<i64: 1, 4, 32>}, {transform_indices = @transform_4, window_bounds = array<i64: 1, 1, 32>}, {transform_indices = @transform_5, window_bounds = array<i64: 1, 32, 32>}, {transform_indices = @transform_6, window_bounds = array<i64: 1, 1, 32>}, {transform_indices = @transform_7, window_bounds = array<i64: 1, 32, 128>}, {transform_indices = @transform_8, window_bounds = array<i64: 1, 1, 128>}, {transform_indices = @transform_9, window_bounds = array<i64: 1, 8, 128>}]} {
    %c0 = arith.constant 0 : index
    %c0_0 = arith.constant 0 : index
    %0 = vector.load %arg2[%c0, %c0_0] : memref<8x12xf32, #tpu.memory_space<vmem>>, vector<8x12xf32>
    %c0_1 = arith.constant 0 : index
    %c0_2 = arith.constant 0 : index
    %1 = vector.load %arg3[%c0_1, %c0_2] : memref<8x4xf32, #tpu.memory_space<vmem>>, vector<8x4xf32>
    %c0_3 = arith.constant 0 : index
    %c0_4 = arith.constant 0 : index
    %c0_5 = arith.constant 0 : index
    %2 = vector.load %arg4[%c0_3, %c0_4, %c0_5] : memref<1x12x32xf32, #tpu.memory_space<vmem>>, vector<1x12x32xf32>
    %3 = vector.shape_cast %2 : vector<1x12x32xf32> to vector<12x32xf32>
    %cst = arith.constant dense<0.000000e+00> : vector<8x32xf32>
    %4 = tpu.matmul %0, %3, %cst {dimension_numbers = #tpu.dot_dimension_numbers<[1], [0], [0], [1], [0, 0, 1, 1], [], []>} : vector<8x12xf32>, vector<12x32xf32>, vector<8x32xf32> -> vector<8x32xf32>
    %c0_6 = arith.constant 0 : index
    %c0_7 = arith.constant 0 : index
    %c0_8 = arith.constant 0 : index
    %5 = vector.load %arg5[%c0_6, %c0_7, %c0_8] : memref<1x4x32xf32, #tpu.memory_space<vmem>>, vector<1x4x32xf32>
    %6 = vector.shape_cast %5 : vector<1x4x32xf32> to vector<4x32xf32>
    %cst_9 = arith.constant dense<0.000000e+00> : vector<8x32xf32>
    %7 = tpu.matmul %1, %6, %cst_9 {dimension_numbers = #tpu.dot_dimension_numbers<[1], [0], [0], [1], [0, 0, 1, 1], [], []>} : vector<8x4xf32>, vector<4x32xf32>, vector<8x32xf32> -> vector<8x32xf32>
    %8 = arith.addf %4, %7 : vector<8x32xf32>
    %c0_10 = arith.constant 0 : index
    %c0_11 = arith.constant 0 : index
    %c0_12 = arith.constant 0 : index
    %9 = vector.load %arg6[%c0_10, %c0_11, %c0_12] : memref<1x1x32xf32, #tpu.memory_space<vmem>>, vector<1x1x32xf32>
    %10 = vector.shape_cast %9 : vector<1x1x32xf32> to vector<1x32xf32>
    %11 = vector.broadcast %10 : vector<1x32xf32> to vector<8x32xf32>
    %12 = arith.addf %8, %11 : vector<8x32xf32>
    %cst_13 = arith.constant 0.000000e+00 : f32
    %13 = vector.broadcast %cst_13 : f32 to vector<8x32xf32>
    %14 = arith.maximumf %12, %13 : vector<8x32xf32>
    %c0_14 = arith.constant 0 : index
    %c0_15 = arith.constant 0 : index
    %c0_16 = arith.constant 0 : index
    %15 = vector.load %arg7[%c0_14, %c0_15, %c0_16] : memref<1x32x32xf32, #tpu.memory_space<vmem>>, vector<1x32x32xf32>
    %16 = vector.shape_cast %15 : vector<1x32x32xf32> to vector<32x32xf32>
    %cst_17 = arith.constant dense<0.000000e+00> : vector<8x32xf32>
    %17 = tpu.matmul %14, %16, %cst_17 {dimension_numbers = #tpu.dot_dimension_numbers<[1], [0], [0], [1], [0, 0, 1, 1], [], []>} : vector<8x32xf32>, vector<32x32xf32>, vector<8x32xf32> -> vector<8x32xf32>
    %c0_18 = arith.constant 0 : index
    %c0_19 = arith.constant 0 : index
    %c0_20 = arith.constant 0 : index
    %18 = vector.load %arg8[%c0_18, %c0_19, %c0_20] : memref<1x1x32xf32, #tpu.memory_space<vmem>>, vector<1x1x32xf32>
    %19 = vector.shape_cast %18 : vector<1x1x32xf32> to vector<1x32xf32>
    %20 = vector.broadcast %19 : vector<1x32xf32> to vector<8x32xf32>
    %21 = arith.addf %17, %20 : vector<8x32xf32>
    %cst_21 = arith.constant 0.000000e+00 : f32
    %22 = vector.broadcast %cst_21 : f32 to vector<8x32xf32>
    %23 = arith.maximumf %21, %22 : vector<8x32xf32>
    %c0_22 = arith.constant 0 : index
    %c0_23 = arith.constant 0 : index
    %c0_24 = arith.constant 0 : index
    %24 = vector.load %arg9[%c0_22, %c0_23, %c0_24] : memref<1x32x128xf32, #tpu.memory_space<vmem>>, vector<1x32x128xf32>
    %25 = vector.shape_cast %24 : vector<1x32x128xf32> to vector<32x128xf32>
    %cst_25 = arith.constant dense<0.000000e+00> : vector<8x128xf32>
    %26 = tpu.matmul %23, %25, %cst_25 {dimension_numbers = #tpu.dot_dimension_numbers<[1], [0], [0], [1], [0, 0, 1, 1], [], []>} : vector<8x32xf32>, vector<32x128xf32>, vector<8x128xf32> -> vector<8x128xf32>
    %c0_26 = arith.constant 0 : index
    %c0_27 = arith.constant 0 : index
    %c0_28 = arith.constant 0 : index
    %27 = vector.load %arg10[%c0_26, %c0_27, %c0_28] : memref<1x1x128xf32, #tpu.memory_space<vmem>>, vector<1x1x128xf32>
    %28 = vector.shape_cast %27 : vector<1x1x128xf32> to vector<1x128xf32>
    %29 = vector.broadcast %28 : vector<1x128xf32> to vector<8x128xf32>
    %30 = arith.addf %26, %29 : vector<8x128xf32>
    %c0_29 = arith.constant 0 : index
    %c0_30 = arith.constant 0 : index
    %c0_31 = arith.constant 0 : index
    %31 = vector.load %arg11[%c0_29, %c0_30, %c0_31] : memref<1x8x128xf32, #tpu.memory_space<vmem>>, vector<1x8x128xf32>
    %32 = vector.shape_cast %31 : vector<1x8x128xf32> to vector<8x128xf32>
    %33 = vector.shape_cast %30 : vector<8x128xf32> to vector<1x8x128xf32>
    tpu.vector_store %arg11[%c0_29, %c0_30, %c0_31], %33 {strides = array<i32>} : memref<1x8x128xf32, #tpu.memory_space<vmem>>, vector<1x8x128xf32>,
    return
  }
  func.func @transform_0(%arg0: i32, %arg1: i32) -> (i32, i32) {
    %c0_i32 = arith.constant 0 : i32
    %c0_i32_0 = arith.constant 0 : i32
    return %arg1, %c0_i32 : i32, i32
  }
  func.func @transform_1(%arg0: i32, %arg1: i32) -> (i32, i32) {
    %c0_i32 = arith.constant 0 : i32
    %c0_i32_0 = arith.constant 0 : i32
    return %arg1, %c0_i32 : i32, i32
  }
  func.func @transform_2(%arg0: i32, %arg1: i32) -> (i32, i32, i32) {
    %c0_i32 = arith.constant 0 : i32
    %c0_i32_0 = arith.constant 0 : i32
    %c0_i32_1 = arith.constant 0 : i32
    return %arg0, %c0_i32, %c0_i32_0 : i32, i32, i32
  }
  func.func @transform_3(%arg0: i32, %arg1: i32) -> (i32, i32, i32) {
    %c0_i32 = arith.constant 0 : i32
    %c0_i32_0 = arith.constant 0 : i32
    %c0_i32_1 = arith.constant 0 : i32
    return %arg0, %c0_i32, %c0_i32_0 : i32, i32, i32
  }
  func.func @transform_4(%arg0: i32, %arg1: i32) -> (i32, i32, i32) {
    %c0_i32 = arith.constant 0 : i32
    %c0_i32_0 = arith.constant 0 : i32
    %c0_i32_1 = arith.constant 0 : i32
    return %arg0, %c0_i32, %c0_i32_0 : i32, i32, i32
  }
  func.func @transform_5(%arg0: i32, %arg1: i32) -> (i32, i32, i32) {
    %c0_i32 = arith.constant 0 : i32
    %c0_i32_0 = arith.constant 0 : i32
    %c0_i32_1 = arith.constant 0 : i32
    return %arg0, %c0_i32, %c0_i32_0 : i32, i32, i32
  }
  func.func @transform_6(%arg0: i32, %arg1: i32) -> (i32, i32, i32) {
    %c0_i32 = arith.constant 0 : i32
    %c0_i32_0 = arith.constant 0 : i32
    %c0_i32_1 = arith.constant 0 : i32
    return %arg0, %c0_i32, %c0_i32_0 : i32, i32, i32
  }
  func.func @transform_7(%arg0: i32, %arg1: i32) -> (i32, i32, i32) {
    %c0_i32 = arith.constant 0 : i32
    %c0_i32_0 = arith.constant 0 : i32
    %c0_i32_1 = arith.constant 0 : i32
    return %arg0, %c0_i32, %c0_i32_0 : i32, i32, i32
  }
  func.func @transform_8(%arg0: i32, %arg1: i32) -> (i32, i32, i32) {
    %c0_i32 = arith.constant 0 : i32
    %c0_i32_0 = arith.constant 0 : i32
    %c0_i32_1 = arith.constant 0 : i32
    return %arg0, %c0_i32, %c0_i32_0 : i32, i32, i32
  }
  func.func @transform_9(%arg0: i32, %arg1: i32) -> (i32, i32, i32) {
    %c0_i32 = arith.constant 0 : i32
    %c0_i32_0 = arith.constant 0 : i32
    return %arg0, %arg1, %c0_i32 : i32, i32, i32
  }
}

</mosaic_0001>

<bundles_post_ra>
// kernel: tpu_custom_call.1
= control target key start
LH: loop header
LB: loop body
LE: loop exit
PB: predicated region body
PF: predicated region fallthrough
CT: control target
= control target key end

     0   :  { %s1496_s0 = inlined_call_operand.vmem [shape: f32[8,12], index: 0, kind: input, shape index: {}]   ;;  %s1497_s1 = inlined_call_operand.vmem [shape: f32[8,4], index: 1, kind: input, shape index: {}]   ;;  %s1498_s2 = inlined_call_operand.vmem [shape: f32[2,12,32], index: 2, kind: input, shape index: {}]   ;;  %s1499_s3 = inlined_call_operand.hbm [shape: f32[2,4,32], index: 3, kind: input, shape index: {}]   ;;  %s1500_s4 = inlined_call_operand.hbm [shape: f32[2,1,32], index: 4, kind: input, shape index: {}]   ;;  %s1501_s5 = inlined_call_operand.vmem [shape: f32[2,32,32], index: 5, kind: input, shape index: {}]   ;;  %s1502_s6 = inlined_call_operand.hbm [shape: f32[2,1,32], index: 6, kind: input, shape index: {}]   ;;  %s1503_s7 = inlined_call_operand.hbm [shape: f32[2,32,128], index: 7, kind: input, shape index: {}]   ;;  %s1504_s8 = inlined_call_operand.vmem [shape: f32[2,1,128], index: 8, kind: input, shape index: {}]   ;;  %s1505_s9 = inlined_call_operand.hbm [shape: f32[2,8,128], index: 9, kind: output, shape index: {}]  }
   0x1   :  { %1515 = sst [smem:[#allocation22_spill]] %s1500_s4 }
   0x2   :  { %1516 = sst [smem:[#allocation23_spill]] %s1505_s9 }
   0x3   :  { %14 = vsyncpa [#allocation3], 0 }
   0x4   :  { %16 = vsyncpa [#allocation3 + $0x1], 0 }
   0x5   :  { %17 = vsyncpa [#allocation6], 0 }
   0x6   :  { %19 = vsyncpa [#allocation6 + $0x1], 0 }
   0x7   :  { %20 = vsyncpa [#allocation9], 0 }
   0x8   :  { %22 = vsyncpa [#allocation9 + $0x1], 0 }
   0x9   :  { %23 = vsyncpa [#allocation4], 0 }
   0xa   :  { %25 = vsyncpa [#allocation4 + $0x1], 0  ;;  %s1287_s30 = smov 0   ;;  %s1289_s10 = smov 0  }
   0xb   :  { %s1291_s11 = smov 0   ;;  %s1293_s12 = smov 0  }
   0xc   :  { %s1295_s13 = smov 0   ;;  %s1297_s14 = smov 0  }
   0xd LB: > { %1517 = sst [smem:[#allocation15_spill]] %s1213_s30  ;;  %s1318_s15 = sadd.s32 4294967295, %s1233_s14   ;;  %s1233_s14 = sphi %s1297_s14, %s31_s14   ;;  %s1229_s13 = sphi %s1295_s13, %s1543_s13   ;;  %s1225_s12 = sphi %s1293_s12, %s1542_s12   ;;  %s1221_s11 = sphi %s1291_s11, %s1541_s11   ;;  %s1217_s10 = sphi %s1289_s10, %s1540_s10   ;;  %s1213_s30 = sphi %s1287_s30, %s1539_s30  }
   0xe   : > { %1518 = sst [smem:[#allocation16_spill]] %s1221_s11  ;;  %s910_s16 = sadd.s32 4294967294, %s1233_s14  }
   0xf   : > { %1519 = sst [smem:[#allocation17_spill]] %s1233_s14  ;;  %s43_s17 = sadd.s32 1, %s1229_s13 }
  0x10   : > { %s128_s18 = sadd.s32 1, %s1221_s11  ;;  %p45_p0 = scmp.ge.s32.totalorder %s43_s17, 2 }
  0x11   : > { %p135_p1 = scmp.ne.s32.totalorder %s1221_s11, %s1217_s10  ;;  %p136_p2 = scmp.eq.s32.totalorder %s1233_s14, 0 }
  0x12   : > { %p141_p3 = scmp.ne.s32.totalorder %s1217_s10, %s1213_s30  ;;  %s1545_s17 = smov (%p45_p0, %s43_s17), 0 }
  0x13   : > { %1520 = sst [smem:[#allocation18_spill]] %s1545_s17  ;;  %p1330_p4 = por %p136_p2, %p135_p1 }
  0x14   : > { %p142_p5 = scmp.eq.s32.totalorder %s1318_s15, 0  ;;  %s125_s20 = ssub.s32 %s1229_s13, %s1545_s17 }
  0x15   : > { %p297_p6 = scmp.eq.s32.totalorder %s1318_s15, 1  ;;  %p126_p7 = scmp.eq.s32.totalorder %s125_s20, 0 }
  0x16   : > { %p1338_p8 = por %p142_p5, %p141_p3  ;;  %p303_p10 = scmp.eq.s32.totalorder %s910_s16, 1 }
  0x17   : > { %p1342_p9 = por %p297_p6, %p135_p1  ;;  %p914_p12 = scmp.ge.s32.totalorder %s1233_s14, 2 }
  0x18   : > { %s1347_s23 = scalar_select %p126_p7, %s1221_s11, %s128_s18  }
  0x19   : > { %s1523_s22 = scalar_select %p1342_p9, 1, 0 }
  0x1a   : > { %1525 = sst [smem:[#allocation20_spill]] %s1347_s23  ;;  %p1349_p11 = por %p303_p10, %p141_p3 }
  0x1b   : > { %1524 = sst [smem:[#allocation19_spill]] %s1523_s22  ;;  %p968_p13 = scmp.lt.s32.totalorder %s1233_s14, 2 }
  0x1c   : > { %s1526_s24 = scalar_select %p1349_p11, 1, 0 }
  0x1d   : > { %s1356_s25 = sand.u32 1, %s1221_s11   ;;  %s364_s26 = sand.u32 1, %s1233_s14  }
  0x1e   : > { %1527 = sst [smem:[#allocation21_spill]] %s1526_s24  ;;  %p1361_p0 = pnand %p968_p13, %p1330_p4 }
  0x1f   : > { %s1529_s4 = sld [smem:[#allocation22_spill]]  ;;  %s367_s18 = scalar_lea.vmem [#allocation5], %s1356_s25 }
  0x20   : > { %s374_s20 = sshll.u32 %s367_s18, 4  ;;  %s365_s23 = scalar_lea.sflag [#allocation6], %s364_s26  ;;  %s375_s20 = int_to_ptr.vmem [resolvable:$true] %s374_s20 }
  0x21   : > { %p920_p1 = scmp.ge.s32.totalorder %s1233_s14, 1  ;;  %p432_p2 = scmp.lt.s32.totalorder %s1233_s14, 3 }
  0x22   : > { %s915_s28 = sshll.u32 %s1356_s25, 2  ;;  %s916_s29 = sshll.u32 %s1229_s13, 2 }
  0x23   : > { %p1374_p3 = pnand %p920_p1, %p432_p2  ;;  %s349_s26 = scalar_lea.vmem [#allocation2], %s915_s28 }
  0x24   : > { %s357_s24 = sshll.u32 %s349_s26, 4  ;;  %s395_s30 = scalar_lea.hbm %s1502_s6, %s1229_s13  ;;  %s358_s24 = int_to_ptr.vmem [resolvable:$true] %s357_s24 }
  0x25   : > { %s370_s16 = scalar_lea.hbm %s1529_s4, %s1229_s13  ;;  %s353_s4 = scalar_lea.hbm %s1499_s3, %s916_s29 }
  0x26   : > { %s372_s17 = sshll.u32 %s370_s16, 4  ;;  %s355_s11 = sshll.u32 %s353_s4, 4  ;;  %s373_s17 = int_to_ptr.hbm [resolvable:$true] %s372_s17  ;;  %s356_s11 = int_to_ptr.hbm [resolvable:$true] %s355_s11 }
  0x27   : > { %957 = dma.hbm_to_vmem [thread:$0]  (!%p1361_p0), %s373_s17, 16, %s375_s20, %s365_s23  }
  0x28   : > { %s346_s17 = scalar_lea.sflag [#allocation3], %s1356_s25  ;;  %s397_s22 = sshll.u32 %s395_s30, 4  ;;  %s398_s22 = int_to_ptr.hbm [resolvable:$true] %s397_s22 }
  0x29   : > { %954 = dma.hbm_to_vmem [thread:$0]  (!%p1361_p0), %s356_s11, 64, %s358_s24, %s346_s17  }
  0x2a   : > { %s392_s9 = scalar_lea.vmem [#allocation7], %s1356_s25  ;;  %s917_s4 = sshll.u32 %s1356_s25, 5 }
  0x2b   : > { %s399_s18 = sshll.u32 %s392_s9, 4  ;;  %s938_s28 = sshll.u32 %s1229_s13, 5  ;;  %s400_s18 = int_to_ptr.vmem [resolvable:$true] %s399_s18 }
  0x2c   : > { %960 = dma.hbm_to_vmem [thread:$0]  (!%p1361_p0), %s398_s22, 16, %s400_s18, %s365_s23  }
  0x2d   : > { %s415_s26 = scalar_lea.hbm %s1503_s7, %s938_s28  ;;  %s410_s11 = scalar_lea.vmem [#allocation8], %s917_s4 }
  0x2e   : > { %s418_s24 = sshll.u32 %s410_s11, 4  ;;  %s416_s17 = sshll.u32 %s415_s26, 4  ;;  %s419_s24 = int_to_ptr.vmem [resolvable:$true] %s418_s24  ;;  %s417_s17 = int_to_ptr.hbm [resolvable:$true] %s416_s17 }
  0x2f   : > { %s407_s14 = scalar_lea.sflag [#allocation9], %s1356_s25  ;;  %s1235_s30 = smov 128  }
  0x30   : > { %s1236_s20 = smov 8   ;;  %436 = sbr.rel (%p1374_p3) target bundleno = 475 (0x1db), region = 56 }
  0x31   : > { %963 = dma.hbm_to_vmem [thread:$0]  (!%p1361_p0), %s417_s17, 512, %s419_s24, %s407_s14, %s1235_s30, %s1235_s30, %s1236_s20  }
  0x32   : > { %s1404_s9 = sand.u32 (!%p1374_p3), 1, %s1217_s10  }
  0x33   : > { %s921_s22 = sshll.u32 (!%p1374_p3), %s1404_s9, 2  ;;  %s439_s23 = scalar_lea.sflag (!%p1374_p3), [#allocation3], %s1404_s9 }
  0x34   : > { %s442_s18 = scalar_lea.vmem (!%p1374_p3), [#allocation2], %s921_s22 }
  0x35   : > { %1196 = dma.done.wait (%p1338_p8), %s439_s23, 64  }
  0x36   : > { %1198 = vsyncadd (%p1338_p8), %s439_s23, 4294967232  ;;  %s448_s25 = sand.u32 1, %s1318_s15   ;;  %s451_s19 = scalar_lea.vmem [#allocation5], %s1404_s9 }
  0x37   : > { %s449_s27 = scalar_lea.sflag [#allocation6], %s448_s25 }
  0x38   : > { %1200 = dma.done.wait (%p1338_p8), %s449_s27, 32  }
  0x39   : > { %1202 = vsyncadd (%p1338_p8), %s449_s27, 4294967264  ;;  %s922_s4 = sshll.u32 %s1404_s9, 5  ;;  %s460_s28 = scalar_lea.vmem [#allocation7], %s1404_s9 }
  0x3a   : > { %s467_s29 = scalar_lea.sflag [#allocation9], %s1404_s9  ;;  %s1421_s16 = scalar_lea.vmem [#allocation8], %s922_s4 }
  0x3b   : > { %1204 = dma.done.wait (%p1338_p8), %s467_s29, 512  }
  0x3c   : > { %1206 = vsyncadd (%p1338_p8), %s467_s29, 4294966784  ;;  %p548_p4 = scmp.lt.s32.totalorder %s1225_s12, 1  ;;  %vm570_vm0 = vcmask 1043456   ;;  %vm566_vm1 = vcmask 31744   ;;  %v565_v1 = vld [vmem:[%s442_s18] sm:$0xf] }
  0x3d   : > { %928 = vmatpush.msk.msra.mxu0 %vm570_vm0, %v565_v1  ;;  %v562_v3 = vld [vmem:[%s1497_s1] sm:$0xff]  ;;  %vm594_vm2 = vcmask 97280   ;;  %vm635_vm3 = vcmask 261120   ;;  %v661_v17 = vld [vmem:[%s1421_s16 + $0x8] sm:$0xff]  ;;  %v660_v18 = vld [vmem:[%s1421_s16] sm:$0xff] }
  0x3e   : > { %s1429_s15 = scalar_select %p548_p4, %s1225_s12, 1  ;;  %v561_v4 = vld [vmem:[%s1496_s0] sm:$0xff]  ;;  %929 = vmatmul.msk.f32.vlgmr.msra.gmra.mxu0 %vm566_vm1, %v562_v3 }
  0x3f   : > { %v663_v9 = vld [vmem:[%s1421_s16 + $0x18] sm:$0xff]  ;;  %v1020_v11 = vld [vmem:[%s451_s19] ss:$0 sm:$0xff]  ;;  %s923_s19 = sshll.u32 %s1404_s9, 3 }
  0x40   : > { %s939_s26 = sshll.u32 %s1429_s15, 4  ;;  %s940_s22 = sshll.u32 %s1429_s15, 5  ;;  %683 = vmatpush.msra.mxu3 %v663_v9  ;;  %v662_v16 = vld [vmem:[%s1421_s16 + $0x10] sm:$0xff] }
  0x41   : > { %s552_s17 = scalar_lea.vmem %s1498_s2, %s939_s26  ;;  %s557_s25 = scalar_lea.vmem %s1501_s5, %s940_s22  ;;  %v1021_v19 = vld [vmem:[%s460_s28] ss:$0 sm:$0xff] }
  0x42   : > { %v564_v0 = vld [vmem:[%s552_s17 + $0x8] sm:$0xf]  ;;  %v563_v2 = vld [vmem:[%s552_s17] sm:$0xff]  ;;  %v630_v5 = vld [vmem:[%s557_s25 + $0x18] sm:$0xff]  ;;  %s560_s29 = scalar_lea.vmem %s1504_s8, %s1429_s15  ;;  %684 = vmatpush.msra.mxu3 %v662_v16  ;;  %s935_s26 = sshll.u32 %s1225_s12, 3 }
  0x43   : > { %930 = vmatpush.msk.msra.mxu1 %vm570_vm0, %v564_v0  ;;  %651 = vmatpush.msra.mxu2 %v630_v5  ;;  %v629_v6 = vld [vmem:[%s557_s25 + $0x10] sm:$0xff]  ;;  %v628_v7 = vld [vmem:[%s557_s25 + $0x8] sm:$0xff]  ;;  %v627_v8 = vld [vmem:[%s557_s25] sm:$0xff]  ;;  %s1531_s17 = sld [smem:[#allocation23_spill]]  ;;  %s539_s14 = scalar_lea.vmem [#allocation10], %s923_s19 }
  0x44   : > { %685 = vmatpush.msra.mxu3 %v661_v17  ;;  %v1022_v23 = vld [vmem:[%s560_s29] ss:$0 sm:$0xff]  ;;  %s706_s30 = sshll.u32 %s539_s14, 4  ;;  %s693_s28 = scalar_lea.sflag [#allocation4], %s1404_s9  ;;  %s707_s30 = int_to_ptr.vmem [resolvable:$true] %s706_s30 }
  0x45   : > { %616 = vmatpush.msra.mxu1 %v563_v2  ;;  %652 = vmatpush.msra.mxu2 %v629_v6 }
  0x46   : > { %931 = vmatmul.msk.f32.vlgmr.msra.gmra.mxu1 %vm594_vm2, %v561_v4  ;;  %686 = vmatpush.msra.mxu3 %v660_v18 }
  0x47   : > { %653 = vmatpush.msra.mxu2 %v628_v7 }
  0x49   : > { %654 = vmatpush.msra.mxu2 %v627_v8  ;;  %s704_s15 = scalar_lea.hbm %s1531_s17, %s935_s26  ;;  %s1163_s18 = scalar_lea.hbm %s1531_s17, 16 }
  0x4a   : > { %s708_s20 = sshll.u32 %s704_s15, 4  ;;  %s709_s20 = int_to_ptr.hbm [resolvable:$true] %s708_s20 }
  0x4b   : > { %s1157_s16 = sshra.s32 %s709_s20, 4  ;;  %s1158_s16 = int_to_ptr.hbm [resolvable:$true] %s1157_s16 }
  0x4c   : > { %s1159_s22 = scalar_lea.hbm %s1158_s16, 8  ;;  %p1164_p8 = scmp.lt.s32.totalorder %s1158_s16, %s1531_s17 }
  0x4d   : > { %p1160_p5 = scmp.ne.s32.totalorder %s1158_s16, %s1159_s22  ;;  %p1165_p10 = scmp.lt.s32.totalorder %s1163_s18, %s1159_s22 }
  0x4f   : > { %p1161_p6 = pnand %p1160_p5, %p1342_p9  ;;  %p1166_p13 = por %p1165_p10, %p1164_p8 }
  0x51   : > { %p1162_p7 = pneg %p1161_p6 }
  0x53   : > { %p1167_p0 = pnand %p1166_p13, %p1162_p7 }
  0xbb   : > { %v591_v10 = vpop.f32.mrf.mxu0 }
  0xc3   : > { %v618_v12 = vpop.f32.mrf.mxu1 }
  0xc4   : > { %v619_v13 = vadd.f32 %v618_v12, %v591_v10 }
  0xc6   : > { %v625_v14 = vadd.f32 %v1020_v11, %v619_v13 }
  0xc8   : > { %v626_v15 = vmax.f32 %v625_v14, 0.0 }
  0xca   : > { %932 = vmatmul.msk.f32.vlgmr.msra.gmra.mxu2 %vm635_vm3, %v626_v15 }
 0x14d   : > { %v656_v20 = vpop.f32.mrf.mxu2 }
 0x14e   : > { %v657_v21 = vadd.f32 %v1021_v19, %v656_v20 }
 0x150   : > { %v659_v22 = vmax.f32 %v657_v21, 0.0 }
 0x152   : > { %933 = vmatmul.msk.f32.vlgmr.msra.gmra.mxu3 %vm635_vm3, %v659_v22 }
 0x1d5   : > { %v688_v24 = vpop.f32.mrf.mxu3 }
 0x1d6   : > { %v689_v25 = vadd.f32 %v1022_v23, %v688_v24 }
 0x1d8   : > { %691 = vst [vmem:[%s539_s14] sm:$0xff] %v689_v25 }
 0x1d9   : > { %1170 = shalt.err (!%p1167_p0)
}
 0x1da   : > { %949 = dma.vmem_to_hbm [thread:$0]  (%p1342_p9), %s707_s30, 128, %s709_s20, %s693_s28  }
 0x1db PF: > { %s1533_s9 = sld [smem:[#allocation15_spill]]  ;;  %p965_p1 = pnand %p914_p12, %p1349_p11 }
 0x1dc   : > { %s1535_s29 = sld [smem:[#allocation17_spill]] }
 0x1dd   : > { %p966_p2 = pneg %p965_p1 }
 0x1e1   : > { %s720_s19 = sand.u32 1, %s1533_s9  }
 0x1e2   : > { %s721_s26 = scalar_lea.sflag [#allocation4], %s720_s19 }
 0x1e3   : > { %1208 = dma.done.wait (%p966_p2), %s721_s26, 128  }
 0x1e4   : > { %1210 = vsyncadd (%p966_p2), %s721_s26, 4294967168  ;;  %s31_s14 = sadd.s32 1, %s1535_s29   ;;  %s1536_s11 = sld [smem:[#allocation16_spill]] }
 0x1e5   : > { %p28_p3 = scmp.ge.s32.totalorder %s31_s14, 4   ;;  %s1537_s24 = sld [smem:[#allocation20_spill]] }
 0x1e6   : > { %s1538_s21 = sld [smem:[#allocation18_spill]]  ;;  %s1539_s30 = smov %s1217_s10 }
 0x1e7   : > { %s1542_s12 = smov %s1229_s13 }
 0x1e8   :  { %30 = sbr.rel (!%p28_p3) target bundleno = 13 (0xd), region = 153 }
 0x1ea   : > { %s1540_s10 = smov %s1536_s11 }
 0x1eb   : > { %s1541_s11 = smov %s1537_s24 }
 0x1ec   : > { %s1543_s13 = smov %s1538_s21 }
 0x1ed   :  { %727 = vsyncpa [#allocation3], 1 }
 0x1ee   :  { %729 = vsyncpa [#allocation3 + $0x1], 1 }
 0x1ef   :  { %730 = vsyncpa [#allocation6], 1 }
 0x1f0   :  { %732 = vsyncpa [#allocation6 + $0x1], 1 }
 0x1f1   :  { %733 = vsyncpa [#allocation9], 1 }
 0x1f2   :  { %735 = vsyncpa [#allocation9 + $0x1], 1 }
 0x1f3   :  { %736 = vsyncpa [#allocation4], 1 }
 0x1f4   :  { %738 = vsyncpa [#allocation4 + $0x1], 1 }

</bundles_post_ra>
